<compile_context>
chip_gen: v7x
topology: tpu7x:2x2x1
jax: 0.10.0
libtpu: 0.0.40
codegen_flags: <defaults>
</compile_context>

<pallas_src>
import functools

import jax
import jax.numpy as jnp
from jax.experimental import pallas as pl
from jax.experimental.pallas import tpu as pltpu

_LANES = 128


def _round_up(x, m):
    return ((x + m - 1) // m) * m


def _qfl_kernel(pred_ref, label_ref, score_ref, out_ref, *, beta, g, C,
                m_rows, tile_m, need_mask):
    x = pred_ref[...].astype(jnp.float32)            # (tile_m, L) logits
    lab = label_ref[...]                             # (tile_m, g) int32
    sc = score_ref[...].astype(jnp.float32)          # (tile_m, g)
    tm, L = x.shape

    lane = jax.lax.broadcasted_iota(jnp.int32, (tm, L), 1)

    if g == 1:
        # One original row per slab row: label/score are (tile_m, 1) blocks
        # and broadcast across the C lanes directly.
        pos = lane == lab
        t = jnp.where(pos, sc, 0.0)
    else:
        # g = 128 // C original rows packed per 128-lane slab row. Lane-expand
        # label/score across their C-lane groups with one tiny constant matmul
        # each (the MXU is otherwise idle).  expand[p, l] = 1 iff lane l
        # belongs to group p; built without integer div/mod.
        p_idx = jax.lax.broadcasted_iota(jnp.int32, (g, L), 0)
        l_idx = jax.lax.broadcasted_iota(jnp.int32, (g, L), 1)
        expand = ((l_idx >= p_idx * C) &
                  (l_idx < (p_idx + 1) * C)).astype(jnp.float32)
        # Per-group flat positive lane: p*C + label[r, p]. Background
        # (label == C) and negative labels can never match a lane inside their
        # own group, exactly matching one_hot() semantics.
        offs = jax.lax.broadcasted_iota(jnp.int32, (tm, g), 1) * C
        lab_flat = jnp.dot((lab + offs).astype(jnp.float32), expand,
                           preferred_element_type=jnp.float32)    # (tile_m, L)
        sc_e = jnp.dot(sc, expand, preferred_element_type=jnp.float32)
        pos = lane.astype(jnp.float32) == lab_flat
        t = jnp.where(pos, sc_e, 0.0)

    sig = jax.nn.sigmoid(x)
    # Stable BCE-with-logits: max(x,0) - x*t + log1p(exp(-|x|)), with
    # log1p(exp(-|x|)) == -log(max(sig, 1 - sig)) reusing the sigmoid already
    # needed by the modulating factor (one EUP op instead of exp + log1p).
    softplus = -jnp.log(jnp.maximum(sig, 1.0 - sig))
    bce = jnp.maximum(x, 0.0) - x * t + softplus

    diff = t - sig
    if beta == 2.0:                                   # trace-time specialization
        mod = diff * diff                             # no pow -> no extra EUP
    else:
        mod = jnp.power(jnp.abs(diff), beta)
    loss = bce * mod                                  # (tile_m, L)

    if need_mask:
        # Zero rows past the end of the array in the (partial) last block.
        row = (jax.lax.broadcasted_iota(jnp.int32, (tm, L), 0)
               + pl.program_id(0) * tile_m)
        loss = jnp.where(row < m_rows, loss, 0.0)

    # VPU-only partial reduction: collapse tile_m rows onto 8 sublanes, keep
    # all lanes dense; the final scalar reduce happens in the wrapper.
    # TODO(synk): once at the 1-stream HBM roofline (e.g. bf16 pred on v7x),
    # a chunked fori_loop accumulator would also cut VMEM spill traffic.
    out_ref[...] = jnp.sum(loss.reshape(tm // 8, 8, L), axis=0)[None]


def quality_focal_loss_pallas(pred, label, score, *, beta=2.0,
                              loss_weight=1.0, tile_rows=4096):
    """pred: (N, C) logits (f32/bf16); label: (N,) int; score: (N,) float.

    Returns the scalar QFL loss (reduction='mean' over the N rows), matching
    QualityFocalLoss()(pred, (label, score)) with the module defaults.
    """
    # TODO(synk): weight / avg_factor / reduction_override paths of the
    # PyTorch module are not implemented (module defaults only).
    N, C = pred.shape
    assert label.shape == (N,) and score.shape == (N,)

    # Lane-dense packing: put g = 128 // C original rows on each 128-lane slab
    # row when the reshape is free; otherwise fall back to (rows, C) blocks.
    if 0 < C < _LANES and _LANES % C == 0 and N % (_LANES // C) == 0:
        g = _LANES // C
    else:
        g = 1
    L = g * C
    M = N // g

    pred2 = pred.reshape(M, L)                        # free, contiguous reshape
    label2 = label.reshape(M, g).astype(jnp.int32)
    score2 = score.reshape(M, g).astype(jnp.float32)

    # Sublane alignment: 8 rows for 32-bit pred, 16 for bf16/fp16 packing.
    row_align = 8 if pred2.dtype.itemsize == 4 else 16
    tile_m = max(row_align, min(tile_rows, _round_up(M, row_align)))
    tile_m = _round_up(tile_m, row_align)
    # Keep >= 2 blocks when there is enough work so the "parallel" grid axis
    # can span both TensorCores on v7x.
    if M > 2048 and pl.cdiv(M, tile_m) < 2:
        tile_m = _round_up(pl.cdiv(M, 2), row_align)
    num_blocks = pl.cdiv(M, tile_m)
    need_mask = (M % tile_m) != 0

    kernel = functools.partial(_qfl_kernel, beta=beta, g=g, C=C,
                               m_rows=M, tile_m=tile_m, need_mask=need_mask)

    in_bytes = (pred2.size * pred2.dtype.itemsize
                + label2.size * 4 + score2.size * 4)
    cost = pl.CostEstimate(flops=12 * M * L, transcendentals=2 * M * L,
                           bytes_accessed=in_bytes + num_blocks * 8 * L * 4)

    partials = pl.pallas_call(
        kernel,
        out_shape=jax.ShapeDtypeStruct((num_blocks, 8, L), jnp.float32),
        grid_spec=pltpu.PrefetchScalarGridSpec(
            num_scalar_prefetch=0,
            grid=(num_blocks,),
            in_specs=[
                pl.BlockSpec((tile_m, L), lambda i: (i, 0)),   # logits
                pl.BlockSpec((tile_m, g), lambda i: (i, 0)),   # labels
                pl.BlockSpec((tile_m, g), lambda i: (i, 0)),   # quality scores
            ],
            out_specs=pl.BlockSpec((1, 8, L), lambda i: (i, 0, 0)),
        ),
        compiler_params=pltpu.CompilerParams(
            dimension_semantics=("parallel",),
            # Worst-case footprint at tile_rows=4096: 3 inputs x 2 buffers x
            # ~2 MiB (lane-padded) = 12 MiB; 32 MiB leaves headroom for
            # tile_rows=8192 and is under every generation's physical VMEM.
            vmem_limit_bytes=32 * 1024 * 1024,
        ),
        cost_estimate=cost,
    )(pred2, label2, score2)

    # Final reduction: mean over the N rows, times loss_weight, in f32.
    return jnp.sum(partials) * (loss_weight / N)


def quality_focal_loss_ref(pred, label, score, beta=2.0, loss_weight=1.0):
    """Pure-JAX reference mirroring the PyTorch semantics (reduction='mean')."""
    pred = pred.astype(jnp.float32)
    sig = jax.nn.sigmoid(pred)
    softplus_term = jnp.log1p(jnp.exp(-jnp.abs(pred)))
    relu_pred = jnp.maximum(pred, 0.0)
    loss = (relu_pred + softplus_term) * sig ** beta
    C = pred.shape[1]
    col = jnp.arange(C)[None, :]
    pos_mask = ((label >= 0) & (label < C))[:, None] & (col == label[:, None])
    score_b = score.astype(jnp.float32)[:, None]
    pos_bce = relu_pred - pred * score_b + softplus_term
    pos_loss = pos_bce * jnp.abs(score_b - sig) ** beta
    loss = jnp.where(pos_mask, pos_loss, loss)
    return loss_weight * loss.sum(axis=1).mean()


if __name__ == "__main__":
    # QualityFocalLoss has no learnable parameters; beta / loss_weight are the
    # module defaults (2.0, 1.0).

    # Case A: small class count -> packed lane-dense path (g = 128 // C = 8),
    # with a partially filled last block (M = 9 packed rows, tile_m = 16).
    k1, k2, k3 = jax.random.split(jax.random.PRNGKey(0), 3)
    n_a, c_a = 72, 16
    pred_a = 2.0 * jax.random.normal(k1, (n_a, c_a), dtype=jnp.float32)
    # labels in [0, C]; label == C marks background (pure-negative row)
    label_a = jax.random.randint(k2, (n_a,), 0, c_a + 1, dtype=jnp.int32)
    score_a = jax.random.uniform(k3, (n_a,), dtype=jnp.float32)
    out_a = jax.block_until_ready(
        quality_focal_loss_pallas(pred_a, label_a, score_a))
    ref_a = quality_focal_loss_ref(pred_a, label_a, score_a)
    assert jnp.allclose(out_a, ref_a, rtol=1e-4, atol=1e-4), (out_a, ref_a)

    # Case B: COCO-like C = 80 -> general (rows, C) path (g = 1), masked tail.
    k4, k5, k6 = jax.random.split(jax.random.PRNGKey(1), 3)
    n_b, c_b = 100, 80
    pred_b = 2.0 * jax.random.normal(k4, (n_b, c_b), dtype=jnp.float32)
    label_b = jax.random.randint(k5, (n_b,), 0, c_b + 1, dtype=jnp.int32)
    score_b = jax.random.uniform(k6, (n_b,), dtype=jnp.float32)
    out_b = jax.block_until_ready(
        quality_focal_loss_pallas(pred_b, label_b, score_b))
    ref_b = quality_focal_loss_ref(pred_b, label_b, score_b)
    assert jnp.allclose(out_b, ref_b, rtol=1e-4, atol=1e-4), (out_b, ref_b)

    print("KERNEL_OK")
</pallas_src>

<mosaic_0001>
module attributes {stable_mosaic.version = 11 : i64} {
  func.func @_qfl_kernel(%arg0: i32, %arg1: memref<16x128xf32, #tpu.memory_space<vmem>>, %arg2: memref<16x8xi32, #tpu.memory_space<vmem>>, %arg3: memref<16x8xf32, #tpu.memory_space<vmem>>, %arg4: memref<1x8x128xf32, #tpu.memory_space<vmem>>) attributes {dimension_semantics = [#tpu.dimension_semantics<parallel>], iteration_bounds = array<i64: 1>, scalar_prefetch = 0 : i64, scratch_operands = 0 : i64, tpu.core_type = #tpu.core_type<tc>, window_params = [{transform_indices = @transform_0, window_bounds = array<i64: 16, 128>}, {transform_indices = @transform_1, window_bounds = array<i64: 16, 8>}, {transform_indices = @transform_2, window_bounds = array<i64: 16, 8>}, {transform_indices = @transform_3, window_bounds = array<i64: 1, 8, 128>}]} {
    %c0 = arith.constant 0 : index
    %c0_0 = arith.constant 0 : index
    %0 = vector.load %arg1[%c0, %c0_0] : memref<16x128xf32, #tpu.memory_space<vmem>>, vector<16x128xf32>
    %c0_1 = arith.constant 0 : index
    %c0_2 = arith.constant 0 : index
    %1 = vector.load %arg2[%c0_1, %c0_2] : memref<16x8xi32, #tpu.memory_space<vmem>>, vector<16x8xi32>
    %c0_3 = arith.constant 0 : index
    %c0_4 = arith.constant 0 : index
    %2 = vector.load %arg3[%c0_3, %c0_4] : memref<16x8xf32, #tpu.memory_space<vmem>>, vector<16x8xf32>
    %3 = tpu.iota {dimensions = array<i32: 1>} : vector<16x128xi32>
    %4 = tpu.iota {dimensions = array<i32: 0>} : vector<8x128xi32>
    %5 = tpu.iota {dimensions = array<i32: 1>} : vector<8x128xi32>
    %c16_i32 = arith.constant 16 : i32
    %6 = vector.broadcast %c16_i32 : i32 to vector<8x128xi32>
    %7 = arith.muli %4, %6 : vector<8x128xi32>
    %8 = arith.cmpi sge, %5, %7 : vector<8x128xi32>
    %c1_i32 = arith.constant 1 : i32
    %9 = vector.broadcast %c1_i32 : i32 to vector<8x128xi32>
    %10 = arith.addi %4, %9 : vector<8x128xi32>
    %c16_i32_5 = arith.constant 16 : i32
    %11 = vector.broadcast %c16_i32_5 : i32 to vector<8x128xi32>
    %12 = arith.muli %10, %11 : vector<8x128xi32>
    %13 = arith.cmpi slt, %5, %12 : vector<8x128xi32>
    %14 = arith.andi %8, %13 : vector<8x128xi1>
    %15 = arith.extui %14 : vector<8x128xi1> to vector<8x128xi32>
    %16 = arith.sitofp %15 : vector<8x128xi32> to vector<8x128xf32>
    %17 = tpu.iota {dimensions = array<i32: 1>} : vector<16x8xi32>
    %c16_i32_6 = arith.constant 16 : i32
    %18 = vector.broadcast %c16_i32_6 : i32 to vector<16x8xi32>
    %19 = arith.muli %17, %18 : vector<16x8xi32>
    %20 = arith.addi %1, %19 : vector<16x8xi32>
    %21 = arith.sitofp %20 : vector<16x8xi32> to vector<16x8xf32>
    %cst = arith.constant dense<0.000000e+00> : vector<16x128xf32>
    %22 = tpu.matmul %21, %16, %cst {dimension_numbers = #tpu.dot_dimension_numbers<[1], [0], [0], [1], [0, 0, 1, 1], [], []>} : vector<16x8xf32>, vector<8x128xf32>, vector<16x128xf32> -> vector<16x128xf32>
    %cst_7 = arith.constant dense<0.000000e+00> : vector<16x128xf32>
    %23 = tpu.matmul %2, %16, %cst_7 {dimension_numbers = #tpu.dot_dimension_numbers<[1], [0], [0], [1], [0, 0, 1, 1], [], []>} : vector<16x8xf32>, vector<8x128xf32>, vector<16x128xf32> -> vector<16x128xf32>
    %24 = arith.sitofp %3 : vector<16x128xi32> to vector<16x128xf32>
    %25 = arith.cmpf oeq, %24, %22 : vector<16x128xf32>
    %cst_8 = arith.constant 0.000000e+00 : f32
    %26 = vector.broadcast %cst_8 : f32 to vector<16x128xf32>
    %27 = arith.select %25, %23, %26 : vector<16x128xi1>, vector<16x128xf32>
    %28 = arith.negf %0 : vector<16x128xf32>
    %29 = math.exp %28 : vector<16x128xf32>
    %cst_9 = arith.constant 1.000000e+00 : f32
    %30 = vector.broadcast %cst_9 : f32 to vector<16x128xf32>
    %31 = arith.addf %30, %29 : vector<16x128xf32>
    %32 = arith.divf %30, %31 : vector<16x128xf32>
    %cst_10 = arith.constant 1.000000e+00 : f32
    %33 = vector.broadcast %cst_10 : f32 to vector<16x128xf32>
    %34 = arith.subf %33, %32 : vector<16x128xf32>
    %35 = arith.maximumf %32, %34 : vector<16x128xf32>
    %36 = math.log %35 : vector<16x128xf32>
    %cst_11 = arith.constant 0.000000e+00 : f32
    %37 = vector.broadcast %cst_11 : f32 to vector<16x128xf32>
    %38 = arith.subf %37, %36 : vector<16x128xf32>
    %cst_12 = arith.constant 0.000000e+00 : f32
    %39 = vector.broadcast %cst_12 : f32 to vector<16x128xf32>
    %40 = arith.maximumf %0, %39 : vector<16x128xf32>
    %41 = arith.mulf %0, %27 : vector<16x128xf32>
    %42 = arith.subf %40, %41 : vector<16x128xf32>
    %43 = arith.addf %42, %38 : vector<16x128xf32>
    %44 = arith.subf %27, %32 : vector<16x128xf32>
    %45 = arith.mulf %44, %44 : vector<16x128xf32>
    %46 = arith.mulf %43, %45 : vector<16x128xf32>
    %47 = tpu.iota {dimensions = array<i32: 0>} : vector<16x128xi32>
    %c16_i32_13 = arith.constant 16 : i32
    %48 = arith.muli %arg0, %c16_i32_13 : i32
    %49 = vector.broadcast %48 : i32 to vector<16x128xi32>
    %50 = arith.addi %47, %49 : vector<16x128xi32>
    %c9_i32 = arith.constant 9 : i32
    %51 = vector.broadcast %c9_i32 : i32 to vector<16x128xi32>
    %52 = arith.cmpi slt, %50, %51 : vector<16x128xi32>
    %cst_14 = arith.constant 0.000000e+00 : f32
    %53 = vector.broadcast %cst_14 : f32 to vector<16x128xf32>
    %54 = arith.select %52, %46, %53 : vector<16x128xi1>, vector<16x128xf32>
    %55 = vector.shape_cast %54 : vector<16x128xf32> to vector<2x8x128xf32>
    %cst_15 = arith.constant dense<0.000000e+00> : vector<8x128xf32>
    %56 = vector.multi_reduction <add>, %55, %cst_15 [0] : vector<2x8x128xf32> to vector<8x128xf32>
    %57 = vector.shape_cast %56 : vector<8x128xf32> to vector<1x8x128xf32>
    %c0_16 = arith.constant 0 : index
    %c0_17 = arith.constant 0 : index
    %c0_18 = arith.constant 0 : index
    %58 = vector.load %arg4[%c0_16, %c0_17, %c0_18] : memref<1x8x128xf32, #tpu.memory_space<vmem>>, vector<1x8x128xf32>
    tpu.vector_store %arg4[%c0_16, %c0_17, %c0_18], %57 {strides = array<i32>} : memref<1x8x128xf32, #tpu.memory_space<vmem>>, vector<1x8x128xf32>,
    return
  }
  func.func @transform_0(%arg0: i32) -> (i32, i32) {
    %c0_i32 = arith.constant 0 : i32
    %c0_i32_0 = arith.constant 0 : i32
    return %arg0, %c0_i32 : i32, i32
  }
  func.func @transform_1(%arg0: i32) -> (i32, i32) {
    %c0_i32 = arith.constant 0 : i32
    %c0_i32_0 = arith.constant 0 : i32
    return %arg0, %c0_i32 : i32, i32
  }
  func.func @transform_2(%arg0: i32) -> (i32, i32) {
    %c0_i32 = arith.constant 0 : i32
    %c0_i32_0 = arith.constant 0 : i32
    return %arg0, %c0_i32 : i32, i32
  }
  func.func @transform_3(%arg0: i32) -> (i32, i32, i32) {
    %c0_i32 = arith.constant 0 : i32
    %c0_i32_0 = arith.constant 0 : i32
    %c0_i32_1 = arith.constant 0 : i32
    return %arg0, %c0_i32, %c0_i32_0 : i32, i32, i32
  }
}

</mosaic_0001>

<bundles_post_ra>
// kernel: tpu_custom_call.1
= control target key start
LH: loop header
LB: loop body
LE: loop exit
PB: predicated region body
PF: predicated region fallthrough
CT: control target
= control target key end

     0   :  { %v21_v0 = vlaneseq  ;;  %vm38_vm0 = vcmask 64512   ;;  %s391_s0 = inlined_call_operand.vmem [shape: f32[9,128], index: 0, kind: input, shape index: {}]   ;;  %s392_s1 = inlined_call_operand.vmem [shape: s32[9,8], index: 1, kind: input, shape index: {}]   ;;  %s393_s2 = inlined_call_operand.vmem [shape: f32[9,8], index: 2, kind: input, shape index: {}]   ;;  %s394_s3 = inlined_call_operand.hbm [shape: f32[1,8,128], index: 3, kind: output, shape index: {}]  }
   0x1   :  { %v19_v1 = vld [vmem:[%s393_s2] sm:$0xff] }
   0x2   :  { %289 = vmatprep.mubr.msk.f32.mxu1 %vm38_vm0, %v19_v1 }
   0x3   :  { %8 = vsyncpa [#allocation3], 0  ;;  %v22_v2 = vand.u32 127, %v21_v0  ;;  %v356_v3 = vshrl.u32 %v21_v0, 7  ;;  %v17_v4 = vld [vmem:[%s392_s1] sm:$0xff]  ;;  %v18_v5 = vld [vmem:[%s392_s1 + $0x8] sm:$0xff] }
   0x4   :  { %v330_v14 = vmov 1.0   ;;  %v20_v15 = vld [vmem:[%s393_s2 + $0x8] sm:$0xff]  ;;  %v15_v17 = vld [vmem:[%s391_s0] sm:$0xff] }
   0x5   :  { %v25_v6 = vmul.u32 16, %v356_v3  ;;  %v27_v7 = vadd.s32 1, %v356_v3  ;;  %v33_v8 = vmul.u32 16, %v22_v2  ;;  %v16_v16 = vld [vmem:[%s391_s0 + $0x8] sm:$0xff]  ;;  %v274_v19 = vmul.f32 -1.442695, %v15_v17 }
   0x6   :  { %v275_v18 = vmul.f32 -1.442695, %v16_v16  ;;  %v201_v32 = vcvt.s32.f32 %v22_v2  ;;  %v229_v37 = vmax.f32 %v16_v16, 0.0  ;;  %v228_v41 = vmax.f32 %v15_v17, 0.0  ;;  %s331_s0 = smov [#allocation2]  }
   0x7   :  { %vm26_vm1 = vcmp.ge.s32.totalorder %v22_v2, %v25_v6  ;;  %v28_v9 = vmul.u32 16, %v27_v7  ;;  %v34_v10 = vadd.s32 %v33_v8, %v17_v4  ;;  %v35_v11 = vadd.s32 %v33_v8, %v18_v5  ;;  %s259_s2 = sshll.u32 %s331_s0, 4  ;;  %s260_s2 = int_to_ptr.vmem [resolvable:$true] %s259_s2 }
   0x8   :  { %294 = vpow2.f32 %v275_v18  ;;  %v242_v49 = vadd.s32 8, %v356_v3  ;;  %s306_s23 = scalar_lea.vmem %s260_s2, 128  ;;  %p311_p1 = scmp.lt.s32.totalorder %s260_s2, %s260_s2 }
   0x9   :  { %vm29_vm2 = vcmp.lt.s32.totalorder %v22_v2, %v28_v9  ;;  %v36_v12 = vcvt.s32.f32 %v34_v10  ;;  %v37_v13 = vcvt.s32.f32 %v35_v11  ;;  %296 = vpow2.f32 %v274_v19  ;;  %p307_p0 = scmp.ne.s32.totalorder %s260_s2, %s306_s23  ;;  %p312_p2 = scmp.lt.s32.totalorder %s306_s23, %s306_s23 }
   0xa   :  { %vm30_vm3 = vmand %vm26_vm1, %vm29_vm2  ;;  %vm248_vm6 = vcmp.lt.s32.totalorder %v242_v49, 9 }
   0xb   :  { %282 = vmatprep.subr.msk.mxu0 %vm30_vm3, %v330_v14  ;;  %287 = vmatprep.subr.msk.mxu1 %vm30_vm3, %v330_v14  ;;  %p313_p3 = por %p312_p2, %p311_p1 }
   0xc   :  { %283 = vmatpush3.msk.msra.mxu0 %vm30_vm3, %v330_v14  ;;  %284 = vmatprep.mubr.msk.f32.mxu0 %vm38_vm0, %v36_v12 }
   0xd   :  { %288 = vmatpush3.msk.msra.mxu1 %vm30_vm3, %v330_v14  ;;  %285 = vmatmul.mubr.msk.f32.vlgmr.msra.gmra.mrb[0].mxu0 %vm38_vm0, %v37_v13  ;;  %p314_p4 = pnand %p313_p3, %p307_p0 }
   0xe   :  { %290 = vmatmul.mubr.msk.f32.vlgmr.msra.gmra.mrb[0].mxu1 %vm38_vm0, %v20_v15 }
  0x12   :  { %v295_v20 = vpop.eup %294 }
  0x13   :  { %v297_v21 = vpop.eup %296  ;;  %v213_v22 = vadd.f32 1.0, %v295_v20 }
  0x14   :  { %v212_v23 = vadd.f32 1.0, %v297_v21 }
  0x15   :  { %298 = vrcp.f32 %v213_v22 }
  0x16   :  { %300 = vrcp.f32 %v212_v23 }
  0x1f   :  { %v299_v24 = vpop.eup %298 }
  0x20   :  { %v301_v25 = vpop.eup %300  ;;  %v219_v26 = vsub.f32 1.0, %v299_v24 }
  0x21   :  { %v218_v27 = vsub.f32 1.0, %v301_v25 }
  0x22   :  { %v221_v28 = vmax.f32 %v299_v24, %v219_v26 }
  0x23   :  { %v220_v29 = vmax.f32 %v301_v25, %v218_v27 }
  0x24   :  { %302 = vlog2.f32 %v221_v28 }
  0x25   :  { %304 = vlog2.f32 %v220_v29 }
  0x2e   :  { %v303_v30 = vpop.eup %302 }
  0x2f   :  { %v305_v31 = vpop.eup %304  ;;  %v225_v33 = vmul.f32 0.6931472, %v303_v30 }
  0x30   :  { %v223_v35 = vmul.f32 0.6931472, %v305_v31 }
  0x31   :  { %v227_v42 = vsub.f32 0.0, %v225_v33 }
  0x32   :  { %v226_v46 = vsub.f32 0.0, %v223_v35 }
  0xe0   :  { %v286_v34 = vpop.f32.mrb[0].mxu0 }
  0xe1   :  { %vm203_vm4 = vcmp.eq.f32.partialorder %v201_v32, %v286_v34  ;;  %v291_v36 = vpop.f32.mrb[0].mxu1  ;;  %v111_v38 = vpop.f32.mrb[1].mxu0 }
  0xe2   :  { %v205_v39 = vsel %vm203_vm4, %v291_v36, 0.0  ;;  %vm202_vm5 = vcmp.eq.f32.partialorder %v201_v32, %v111_v38  ;;  %v192_v40 = vpop.f32.mrb[1].mxu1 }
  0xe3   :  { %v231_v43 = vmul.f32 %v205_v39, %v16_v16  ;;  %v237_v44 = vsub.f32 %v205_v39, %v299_v24  ;;  %v204_v45 = vsel %vm202_vm5, %v192_v40, 0.0 }
  0xe4   :  { %v230_v47 = vmul.f32 %v204_v45, %v15_v17  ;;  %v236_v48 = vsub.f32 %v204_v45, %v301_v25 }
  0xe5   :  { %v233_v50 = vsub.f32 %v229_v37, %v231_v43  ;;  %v239_v53 = vmul.f32 %v237_v44, %v237_v44 }
  0xe6   :  { %v232_v51 = vsub.f32 %v228_v41, %v230_v47  ;;  %v238_v55 = vmul.f32 %v236_v48, %v236_v48 }
  0xe7   :  { %v235_v52 = vadd.f32 %v233_v50, %v227_v42 }
  0xe8   :  { %v234_v54 = vadd.f32 %v232_v51, %v226_v46 }
  0xe9   :  { %v241_v56 = vmul.f32 %v239_v53, %v235_v52 }
  0xea   :  { %v240_v57 = vmul.f32 %v238_v55, %v234_v54 }
  0xeb   :  { %v250_v58 = vsel %vm248_vm6, %v241_v56, 0.0 }
  0xec   :  { %v251_v59 = vadd.f32 %v250_v58, %v240_v57 }
  0xee   :  { %252 = vst [vmem:[#allocation2] sm:$0xff] %v251_v59 }
  0xef   :  { %317 = shalt.err (!%p314_p4)
}
  0xf0   :  { %s318_s26 = scalar_lea.hbm %s394_s3, 128 }
  0xf1   :  { %p319_p5 = scmp.ne.s32.totalorder %s394_s3, %s318_s26  ;;  %p322_p6 = scmp.lt.u32.totalorder %s318_s26, %s394_s3 }
  0xf3   :  { %p324_p7 = pnand %p322_p6, %p319_p5 }
  0xf5   :  { %327 = shalt.err (!%p324_p7)
}
  0xf6   :  { %262 = dma.vmem_to_hbm [thread:$0]  %s260_s2, 128, %s394_s3, [#allocation3]  }
  0xf7   :  { %328 = dma.done.wait [#allocation3], 128  }
  0xf8   :  { %329 = vsyncadd [#allocation3], 4294967168 }
  0xf9   :  { %266 = vsyncpa [#allocation3], 1 }

</bundles_post_ra>
